<compile_context>
chip_gen: v5e
topology: v5e:2x2
jax: 0.10.0
libtpu: 0.0.40
codegen_flags: <defaults>
</compile_context>

<pallas_src>
import functools

import jax
import jax.numpy as jnp
from jax.experimental import pallas as pl
from jax.experimental.pallas import tpu as pltpu

LN_EPS = 1e-5                      # torch.nn.LayerNorm default
PARAM_DTYPE = jnp.bfloat16         # HBM storage dtype for weights / activations

# bf16 MXU operands only on a real TPU backend; f32 elsewhere (CPU / interpret) where
# bf16 x bf16 -> f32 DotGeneral is not executable.
_ON_TPU = jax.default_backend() == "tpu"
MXU_DTYPE = jnp.bfloat16 if _ON_TPU else jnp.float32


def _vmem_limit_bytes():
    """Generation-aware VMEM budget (v5e/v6e: 128 MiB, v7x: 64 MiB) with 25% headroom."""
    try:
        cap = int(pltpu.get_tpu_info().vmem_capacity_bytes)
    except Exception:
        cap = 64 * 1024 * 1024
    if cap <= 0:
        cap = 64 * 1024 * 1024
    cap = min(cap, 128 * 1024 * 1024)
    return (cap * 3) // 4


VMEM_LIMIT = _vmem_limit_bytes()


def _recip(x):
    # EUP approximate reciprocal on real TPU (free slot); exact divide elsewhere.
    if _ON_TPU:
        return pl.reciprocal(x, approx=True)
    return 1.0 / x


def _layernorm(x, gamma, beta):
    mu = jnp.mean(x, axis=-1, keepdims=True)
    var = jnp.mean((x - mu) ** 2, axis=-1, keepdims=True)
    return (x - mu) * jax.lax.rsqrt(var + LN_EPS) * gamma + beta


def _pick_tile(n, target, quantum=8):
    """Largest tile <= target that divides n and is a multiple of `quantum`
    (falls back to the full dimension if no such divisor exists)."""
    if n <= target:
        return n
    t = (min(target, n) // quantum) * quantum
    while t >= quantum:
        if n % t == 0:
            return t
        t -= quantum
    return n


# ---------------------------------------------------------------------------
# Kernel 1/2: multi-head attention + residual + LayerNorm.
# grid = (batch, q_tile, head_group). Per step: fused Q and K|V projections for one
# head group (wide MXU N-dim), per-head softmax(QK^T)V unrolled inside the step, one
# wide O-projection pass accumulated into an f32 scratch; residual + LN on last group.
# ---------------------------------------------------------------------------
def mha_res_ln_kernel(x_ref, ctx_ref, wq_ref, bq_ref, wkv_ref, bkv_ref,
                      wo_ref, bo_ref, g_ref, b_ref, o_ref, acc_ref,
                      *, heads_per_group, head_dim):
    grp = pl.program_id(2)

    @pl.when(grp == 0)
    def _init():
        acc_ref[...] = jnp.zeros_like(acc_ref)

    G, dh = heads_per_group, head_dim
    gdh = G * dh

    x = x_ref[0].astype(MXU_DTYPE)        # (tq, D) queries / residual stream
    ctx = ctx_ref[0].astype(MXU_DTYPE)    # (S,  D) keys / values source

    # fused projections: softmax scale is pre-folded into Wq/bq at prep time.
    q = (jnp.dot(x, wq_ref[0].astype(MXU_DTYPE), preferred_element_type=jnp.float32)
         + bq_ref[0].astype(jnp.float32)).astype(MXU_DTYPE)          # (tq, gdh)
    kv = (jnp.dot(ctx, wkv_ref[0].astype(MXU_DTYPE), preferred_element_type=jnp.float32)
          + bkv_ref[0].astype(jnp.float32))                          # (S, 2*gdh)
    k = kv[:, :gdh].astype(MXU_DTYPE)
    v = kv[:, gdh:].astype(MXU_DTYPE)

    # per-head attention, unrolled over the (small) head group
    ctx_parts = []
    for h in range(G):
        sl = slice(h * dh, (h + 1) * dh)
        s = jax.lax.dot_general(q[:, sl], k[:, sl], (((1,), (1,)), ((), ())),
                                preferred_element_type=jnp.float32)  # (tq, S)
        s = s - jnp.max(s, axis=-1, keepdims=True)
        e = jnp.exp(s)
        p = (e * _recip(jnp.sum(e, axis=-1, keepdims=True))).astype(MXU_DTYPE)
        ctx_parts.append(jnp.dot(p, v[:, sl], preferred_element_type=jnp.float32))
    ctx_flat = jnp.concatenate(ctx_parts, axis=-1).astype(MXU_DTYPE)  # (tq, gdh)

    # one wide (gdh x D) output-projection pass, accumulated across head groups
    acc_ref[...] += jnp.dot(ctx_flat, wo_ref[0].astype(MXU_DTYPE),
                            preferred_element_type=jnp.float32)

    @pl.when(grp == pl.num_programs(2) - 1)
    def _finalize():
        res = (x_ref[0].astype(jnp.float32) + acc_ref[...]
               + bo_ref[...].astype(jnp.float32))   # dropout == identity (eval mode)
        o_ref[0] = _layernorm(res, g_ref[...], b_ref[...]).astype(o_ref.dtype)


def mha_block(x, ctx, prep):
    B, L, D = x.shape
    S = ctx.shape[1]
    G = prep["heads_per_group"]
    dh = prep["head_dim"]
    ng = prep["wq"].shape[0]
    gdh = G * dh
    tq = _pick_tile(L, 256)

    kernel = functools.partial(mha_res_ln_kernel, heads_per_group=G, head_dim=dh)
    return pl.pallas_call(
        kernel,
        out_shape=jax.ShapeDtypeStruct((B, L, D), x.dtype),
        grid=(B, L // tq, ng),
        in_specs=[
            pl.BlockSpec((1, tq, D), lambda b, t, g: (b, t, 0)),        # x (q-tile)
            pl.BlockSpec((1, S, D), lambda b, t, g: (b, 0, 0)),         # ctx (K/V source)
            pl.BlockSpec((1, D, gdh), lambda b, t, g: (g, 0, 0)),       # Wq group slice
            pl.BlockSpec((1, 1, gdh), lambda b, t, g: (g, 0, 0)),       # bq group slice
            pl.BlockSpec((1, D, 2 * gdh), lambda b, t, g: (g, 0, 0)),   # fused W_k|W_v
            pl.BlockSpec((1, 1, 2 * gdh), lambda b, t, g: (g, 0, 0)),   # fused b_k|b_v
            pl.BlockSpec((1, gdh, D), lambda b, t, g: (g, 0, 0)),       # Wo group slice
            pl.BlockSpec((1, D), lambda b, t, g: (0, 0)),               # bo
            pl.BlockSpec((1, D), lambda b, t, g: (0, 0)),               # LN gamma
            pl.BlockSpec((1, D), lambda b, t, g: (0, 0)),               # LN beta
        ],
        out_specs=pl.BlockSpec((1, tq, D), lambda b, t, g: (b, t, 0)),
        scratch_shapes=[pltpu.VMEM((tq, D), jnp.float32)],
        compiler_params=pltpu.CompilerParams(
            dimension_semantics=("parallel", "parallel", "arbitrary"),
            vmem_limit_bytes=VMEM_LIMIT),
    )(x, ctx, prep["wq"], prep["bq"], prep["wkv"], prep["bkv"],
      prep["wo"], prep["bo"], prep["gamma"], prep["beta"])


# ---------------------------------------------------------------------------
# Kernel 3: Gated MoE FFN + residual + LayerNorm.
# Tokens flattened to (N=B*L, D); grid = (token_tile, expert, d_ff_chunk) so each
# expert's weights stream from HBM once per token tile. Gate probs are computed once
# (outside the expert loop) and streamed per expert as an (E, N, 1) input.
# ---------------------------------------------------------------------------
def moe_res_ln_kernel(x_ref, gate_ref, w1_ref, b1_ref, w2_ref, b2_ref,
                      g_ref, b_ref, o_ref, acc_ref):
    e_idx = pl.program_id(1)
    f_idx = pl.program_id(2)

    @pl.when((e_idx == 0) & (f_idx == 0))
    def _init():
        acc_ref[...] = jnp.zeros_like(acc_ref)

    x = x_ref[...].astype(MXU_DTYPE)                    # (tn, D)
    w_e = gate_ref[0]                                   # (tn, 1) f32 gate prob, this expert

    # this expert / this d_ff chunk: Linear -> ReLU -> Linear (dropout == identity)
    h = (jnp.dot(x, w1_ref[0].astype(MXU_DTYPE), preferred_element_type=jnp.float32)
         + b1_ref[0].astype(jnp.float32))               # (tn, tf)
    h = jnp.maximum(h, 0.0).astype(MXU_DTYPE)
    oe = jnp.dot(h, w2_ref[0].astype(MXU_DTYPE),
                 preferred_element_type=jnp.float32)    # (tn, D) f32
    acc_ref[...] += w_e * oe

    @pl.when(f_idx == 0)
    def _bias():   # expert output bias, added exactly once per expert
        acc_ref[...] += w_e * b2_ref[0].astype(jnp.float32)

    @pl.when((e_idx == pl.num_programs(1) - 1) & (f_idx == pl.num_programs(2) - 1))
    def _finalize():
        res = x_ref[...].astype(jnp.float32) + acc_ref[...]
        o_ref[...] = _layernorm(res, g_ref[...], b_ref[...]).astype(o_ref.dtype)


def moe_block(x, params):
    wg, bg, w1, b1, w2, b2, g3, b3 = params
    B, L, D = x.shape
    E, _, d_ff = w1.shape
    N = B * L
    xf = x.reshape(N, D)

    # Gate softmax hoisted out of the expert loop: computed once here (tiny matmul),
    # streamed per expert into the kernel, and reused exactly for the aux loss.
    logits = (jnp.dot(xf.astype(jnp.float32), wg.astype(jnp.float32))
              + bg.astype(jnp.float32))                       # (N, E) f32
    probs = jax.nn.softmax(logits, axis=-1)
    gate_e = probs.T.reshape(E, N, 1)                         # (E, N, 1) per-expert layout

    tn = _pick_tile(N, 512)
    tf = _pick_tile(d_ff, 512, quantum=128)

    out = pl.pallas_call(
        moe_res_ln_kernel,
        out_shape=jax.ShapeDtypeStruct((N, D), x.dtype),
        grid=(N // tn, E, d_ff // tf),
        in_specs=[
            pl.BlockSpec((tn, D), lambda t, e, f: (t, 0)),          # tokens
            pl.BlockSpec((1, tn, 1), lambda t, e, f: (e, t, 0)),    # gate prob (this expert)
            pl.BlockSpec((1, D, tf), lambda t, e, f: (e, 0, f)),    # expert W1 chunk
            pl.BlockSpec((1, 1, tf), lambda t, e, f: (e, 0, f)),    # expert b1 chunk
            pl.BlockSpec((1, tf, D), lambda t, e, f: (e, f, 0)),    # expert W2 chunk
            pl.BlockSpec((1, 1, D), lambda t, e, f: (e, 0, 0)),     # expert b2
            pl.BlockSpec((1, D), lambda t, e, f: (0, 0)),           # LN3 gamma
            pl.BlockSpec((1, D), lambda t, e, f: (0, 0)),           # LN3 beta
        ],
        out_specs=pl.BlockSpec((tn, D), lambda t, e, f: (t, 0)),
        scratch_shapes=[pltpu.VMEM((tn, D), jnp.float32)],
        compiler_params=pltpu.CompilerParams(
            dimension_semantics=("parallel", "arbitrary", "arbitrary"),
            vmem_limit_bytes=VMEM_LIMIT),
    )(xf, gate_e, w1, b1, w2, b2, g3, b3)

    importance = jnp.mean(probs, axis=0)            # mean gate prob per expert
    aux_loss = E * jnp.sum(importance ** 2)
    return out.reshape(B, L, D), aux_loss


# ---------------------------------------------------------------------------
# Full MoEDecoderLayer forward (glue in plain JAX, hot paths in Pallas)
# ---------------------------------------------------------------------------
def moe_decoder_layer(x, cross, prep):
    # x = norm1(x + self_attn(x, x, x))
    x = mha_block(x, x, prep["self_attn"])
    # x = norm2(x + cross_attn(x, cross, cross))
    x = mha_block(x, cross, prep["cross_attn"])
    # y, aux = moe_ffn(x); out = norm3(x + y)
    return moe_block(x, prep["moe"])


# ---------------------------------------------------------------------------
# One-time parameter preparation (head grouping, QKV fusion, scale folding).
# Hoisted out of the forward path per the perf review.
# ---------------------------------------------------------------------------
def prepare_attention_params(p, n_heads):
    wq, bq, wk, bk, wv, bv, wo, bo, gamma, beta = p
    D = wq.shape[0]
    H = n_heads
    dh = D // H
    # head-group width targeting >= 256 lanes for the fused projections (MXU N-dim)
    G = max(1, min(H, 256 // max(dh, 1)))
    while H % G:
        G -= 1
    ng = H // G
    gdh = G * dh
    scale = 1.0 / (dh ** 0.5)

    def grp_w(w):   # (D, D) -> (ng, D, gdh): contiguous heads grouped along the lanes
        return w.reshape(D, ng, gdh).transpose(1, 0, 2)

    def grp_b(b):   # (1, D) -> (ng, 1, gdh)
        return b.reshape(1, ng, gdh).transpose(1, 0, 2)

    # fold the softmax scale into the Q projection (zero in-kernel cost)
    wq_s = (wq.astype(jnp.float32) * scale).astype(PARAM_DTYPE)
    bq_s = (bq.astype(jnp.float32) * scale).astype(PARAM_DTYPE)

    return dict(
        wq=grp_w(wq_s), bq=grp_b(bq_s),
        wkv=jnp.concatenate([grp_w(wk), grp_w(wv)], axis=-1),
        bkv=jnp.concatenate([grp_b(bk), grp_b(bv)], axis=-1),
        wo=wo.reshape(ng, gdh, D), bo=bo, gamma=gamma, beta=beta,
        heads_per_group=G, head_dim=dh)


def prepare_params(raw, n_heads):
    return {
        "self_attn": prepare_attention_params(raw["self_attn"], n_heads),
        "cross_attn": prepare_attention_params(raw["cross_attn"], n_heads),
        "moe": raw["moe"],
    }


# ---------------------------------------------------------------------------
# Deterministic parameter construction + pure-JAX reference for validation
# (reference mirrors the kernel's storage / MXU-dtype / f32-accumulation policy)
# ---------------------------------------------------------------------------
def make_params(key, d_model, d_ff, num_experts):
    ks = jax.random.split(key, 8)

    def lin(k, din, dout, scale=0.05):
        kw, kb = jax.random.split(k)
        w = (jax.random.normal(kw, (din, dout), jnp.float32) * scale).astype(PARAM_DTYPE)
        b = (jax.random.normal(kb, (1, dout), jnp.float32) * scale).astype(PARAM_DTYPE)
        return w, b

    def attn_params(k):
        k0, k1, k2, k3 = jax.random.split(k, 4)
        wq, bq = lin(k0, d_model, d_model)
        wk, bk = lin(k1, d_model, d_model)
        wv, bv = lin(k2, d_model, d_model)
        wo, bo = lin(k3, d_model, d_model)
        gamma = jnp.ones((1, d_model), jnp.float32)
        beta = jnp.zeros((1, d_model), jnp.float32)
        return (wq, bq, wk, bk, wv, bv, wo, bo, gamma, beta)

    wg, bg = lin(ks[2], d_model, num_experts)
    w1 = (jax.random.normal(ks[3], (num_experts, d_model, d_ff), jnp.float32) * 0.05).astype(PARAM_DTYPE)
    b1 = (jax.random.normal(ks[4], (num_experts, 1, d_ff), jnp.float32) * 0.05).astype(PARAM_DTYPE)
    w2 = (jax.random.normal(ks[5], (num_experts, d_ff, d_model), jnp.float32) * 0.05).astype(PARAM_DTYPE)
    b2 = (jax.random.normal(ks[6], (num_experts, 1, d_model), jnp.float32) * 0.05).astype(PARAM_DTYPE)
    g3 = jnp.ones((1, d_model), jnp.float32)
    b3 = jnp.zeros((1, d_model), jnp.float32)

    return {
        "self_attn": attn_params(ks[0]),
        "cross_attn": attn_params(ks[1]),
        "moe": (wg, bg, w1, b1, w2, b2, g3, b3),
    }


def _ref_mha(x, ctx, p, n_heads):
    wq, bq, wk, bk, wv, bv, wo, bo, g, b = p
    B, L, D = x.shape
    S = ctx.shape[1]
    dh = D // n_heads
    f32 = jnp.float32

    def proj(a, w, bias):
        return (jnp.einsum("bld,de->ble", a.astype(MXU_DTYPE), w.astype(MXU_DTYPE),
                           preferred_element_type=f32) + bias.astype(f32))

    q = proj(x, wq, bq).astype(MXU_DTYPE).reshape(B, L, n_heads, dh)
    k = proj(ctx, wk, bk).astype(MXU_DTYPE).reshape(B, S, n_heads, dh)
    v = proj(ctx, wv, bv).astype(MXU_DTYPE).reshape(B, S, n_heads, dh)
    s = jnp.einsum("blhd,bshd->bhls", q, k, preferred_element_type=f32) / (dh ** 0.5)
    pa = jax.nn.softmax(s, axis=-1).astype(MXU_DTYPE)
    a = jnp.einsum("bhls,bshd->blhd", pa, v,
                   preferred_element_type=f32).astype(MXU_DTYPE).reshape(B, L, D)
    out = (jnp.einsum("bld,de->ble", a, wo.astype(MXU_DTYPE), preferred_element_type=f32)
           + bo.astype(f32))
    res = x.astype(f32) + out
    return _layernorm(res, g, b).astype(x.dtype)


def _ref_moe(x, params, num_experts):
    wg, bg, w1, b1, w2, b2, g3, b3 = params
    f32 = jnp.float32
    logits = jnp.einsum("bld,de->ble", x.astype(f32), wg.astype(f32)) + bg.astype(f32)
    probs = jax.nn.softmax(logits, axis=-1)  # (B, L, E) f32
    h = (jnp.einsum("bld,edf->blef", x.astype(MXU_DTYPE), w1.astype(MXU_DTYPE),
                    preferred_element_type=f32) + b1[:, 0].astype(f32))
    h = jnp.maximum(h, 0.0).astype(MXU_DTYPE)
    eo = (jnp.einsum("blef,efd->bled", h, w2.astype(MXU_DTYPE),
                     preferred_element_type=f32) + b2[:, 0].astype(f32))
    y = jnp.einsum("ble,bled->bld", probs, eo)
    out = _layernorm(x.astype(f32) + y, g3, b3).astype(x.dtype)
    importance = probs.mean(axis=(0, 1))
    aux = num_experts * jnp.sum(importance ** 2)
    return out, aux


def _ref_layer(x, cross, raw, n_heads, num_experts):
    x = _ref_mha(x, x, raw["self_attn"], n_heads)
    x = _ref_mha(x, cross, raw["cross_attn"], n_heads)
    return _ref_moe(x, raw["moe"], num_experts)


if __name__ == "__main__":
    B, L, S = 2, 8, 8
    d_model, n_heads, d_ff, num_experts = 32, 4, 64, 4

    key = jax.random.PRNGKey(0)
    kx, kc, kp = jax.random.split(key, 3)
    x = jax.random.normal(kx, (B, L, d_model), jnp.float32).astype(jnp.bfloat16)
    cross = jax.random.normal(kc, (B, S, d_model), jnp.float32).astype(jnp.bfloat16)

    raw_params = make_params(kp, d_model, d_ff, num_experts)
    prep = prepare_params(raw_params, n_heads)   # one-time layout prep (hoisted)

    out, aux_loss = moe_decoder_layer(x, cross, prep)
    out = jax.block_until_ready(out)
    aux_loss = jax.block_until_ready(aux_loss)

    ref_out, ref_aux = _ref_layer(x, cross, raw_params, n_heads, num_experts)
    ref_out = jax.block_until_ready(ref_out)

    assert out.shape == (B, L, d_model)
    assert out.dtype == jnp.bfloat16
    o32 = out.astype(jnp.float32)
    r32 = ref_out.astype(jnp.float32)
    assert jnp.allclose(o32, r32, atol=5e-2, rtol=5e-2), (
        f"output mismatch vs JAX reference (max abs err {jnp.max(jnp.abs(o32 - r32))})")
    assert jnp.allclose(aux_loss, ref_aux, atol=1e-2, rtol=1e-2), "aux loss mismatch"

    print("KERNEL_OK")
</pallas_src>

<mosaic_0001>
module attributes {stable_mosaic.version = 11 : i64} {
  func.func @mha_res_ln_kernel(%arg0: i32, %arg1: i32, %arg2: i32, %arg3: memref<1x8x32xbf16, #tpu.memory_space<vmem>>, %arg4: memref<1x8x32xbf16, #tpu.memory_space<vmem>>, %arg5: memref<1x32x32xbf16, #tpu.memory_space<vmem>>, %arg6: memref<1x1x32xbf16, #tpu.memory_space<vmem>>, %arg7: memref<1x32x64xbf16, #tpu.memory_space<vmem>>, %arg8: memref<1x1x64xbf16, #tpu.memory_space<vmem>>, %arg9: memref<1x32x32xbf16, #tpu.memory_space<vmem>>, %arg10: memref<1x32xbf16, #tpu.memory_space<vmem>>, %arg11: memref<1x32xf32, #tpu.memory_space<vmem>>, %arg12: memref<1x32xf32, #tpu.memory_space<vmem>>, %arg13: memref<1x8x32xbf16, #tpu.memory_space<vmem>>, %arg14: memref<8x32xf32, #tpu.memory_space<vmem>>) attributes {dimension_semantics = [#tpu.dimension_semantics<parallel>, #tpu.dimension_semantics<parallel>, #tpu.dimension_semantics<arbitrary>], iteration_bounds = array<i64: 2, 1, 1>, scalar_prefetch = 0 : i64, scratch_operands = 1 : i64, tpu.core_type = #tpu.core_type<tc>, window_params = [{transform_indices = @transform_0, window_bounds = array<i64: 1, 8, 32>}, {transform_indices = @transform_1, window_bounds = array<i64: 1, 8, 32>}, {transform_indices = @transform_2, window_bounds = array<i64: 1, 32, 32>}, {transform_indices = @transform_3, window_bounds = array<i64: 1, 1, 32>}, {transform_indices = @transform_4, window_bounds = array<i64: 1, 32, 64>}, {transform_indices = @transform_5, window_bounds = array<i64: 1, 1, 64>}, {transform_indices = @transform_6, window_bounds = array<i64: 1, 32, 32>}, {pipeline_mode = #tpu.pipeline_mode<synchronous>, transform_indices = @transform_7, window_bounds = array<i64: 1, 32>}, {pipeline_mode = #tpu.pipeline_mode<synchronous>, transform_indices = @transform_8, window_bounds = array<i64: 1, 32>}, {pipeline_mode = #tpu.pipeline_mode<synchronous>, transform_indices = @transform_9, window_bounds = array<i64: 1, 32>}, {transform_indices = @transform_10, window_bounds = array<i64: 1, 8, 32>}]} {
    %c0_i32 = arith.constant 0 : i32
    %0 = arith.cmpi eq, %arg2, %c0_i32 : i32
    %1 = arith.extui %0 : i1 to i32
    %c0_i32_0 = arith.constant 0 : i32
    %2 = arith.cmpi ne, %1, %c0_i32_0 : i32
    scf.if %2 {
      %cst_49 = arith.constant 0.000000e+00 : f32
      %104 = vector.broadcast %cst_49 : f32 to vector<8x32xf32>
      %c0_50 = arith.constant 0 : index
      %c0_51 = arith.constant 0 : index
      %105 = vector.load %arg14[%c0_50, %c0_51] : memref<8x32xf32, #tpu.memory_space<vmem>>, vector<8x32xf32>
      tpu.vector_store %arg14[%c0_50, %c0_51], %104 {strides = array<i32>} : memref<8x32xf32, #tpu.memory_space<vmem>>, vector<8x32xf32>,
    } else {
    }
    %c0 = arith.constant 0 : index
    %c0_1 = arith.constant 0 : index
    %c0_2 = arith.constant 0 : index
    %3 = vector.load %arg3[%c0, %c0_1, %c0_2] : memref<1x8x32xbf16, #tpu.memory_space<vmem>>, vector<1x8x32xbf16>
    %4 = vector.shape_cast %3 : vector<1x8x32xbf16> to vector<8x32xbf16>
    %5 = arith.extf %4 : vector<8x32xbf16> to vector<8x32xf32>
    %c0_3 = arith.constant 0 : index
    %c0_4 = arith.constant 0 : index
    %c0_5 = arith.constant 0 : index
    %6 = vector.load %arg4[%c0_3, %c0_4, %c0_5] : memref<1x8x32xbf16, #tpu.memory_space<vmem>>, vector<1x8x32xbf16>
    %7 = vector.shape_cast %6 : vector<1x8x32xbf16> to vector<8x32xbf16>
    %8 = arith.extf %7 : vector<8x32xbf16> to vector<8x32xf32>
    %c0_6 = arith.constant 0 : index
    %c0_7 = arith.constant 0 : index
    %c0_8 = arith.constant 0 : index
    %9 = vector.load %arg5[%c0_6, %c0_7, %c0_8] : memref<1x32x32xbf16, #tpu.memory_space<vmem>>, vector<1x32x32xbf16>
    %10 = vector.shape_cast %9 : vector<1x32x32xbf16> to vector<32x32xbf16>
    %11 = arith.extf %10 : vector<32x32xbf16> to vector<32x32xf32>
    %cst = arith.constant dense<0.000000e+00> : vector<8x32xf32>
    %12 = tpu.matmul %5, %11, %cst {dimension_numbers = #tpu.dot_dimension_numbers<[1], [0], [0], [1], [0, 0, 1, 1], [], []>} : vector<8x32xf32>, vector<32x32xf32>, vector<8x32xf32> -> vector<8x32xf32>
    %c0_9 = arith.constant 0 : index
    %c0_10 = arith.constant 0 : index
    %c0_11 = arith.constant 0 : index
    %13 = vector.load %arg6[%c0_9, %c0_10, %c0_11] : memref<1x1x32xbf16, #tpu.memory_space<vmem>>, vector<1x1x32xbf16>
    %14 = vector.shape_cast %13 : vector<1x1x32xbf16> to vector<1x32xbf16>
    %15 = arith.extf %14 : vector<1x32xbf16> to vector<1x32xf32>
    %16 = vector.broadcast %15 : vector<1x32xf32> to vector<8x32xf32>
    %17 = arith.addf %12, %16 : vector<8x32xf32>
    %c0_12 = arith.constant 0 : index
    %c0_13 = arith.constant 0 : index
    %c0_14 = arith.constant 0 : index
    %18 = vector.load %arg7[%c0_12, %c0_13, %c0_14] : memref<1x32x64xbf16, #tpu.memory_space<vmem>>, vector<1x32x64xbf16>
    %19 = vector.shape_cast %18 : vector<1x32x64xbf16> to vector<32x64xbf16>
    %20 = arith.extf %19 : vector<32x64xbf16> to vector<32x64xf32>
    %cst_15 = arith.constant dense<0.000000e+00> : vector<8x64xf32>
    %21 = tpu.matmul %8, %20, %cst_15 {dimension_numbers = #tpu.dot_dimension_numbers<[1], [0], [0], [1], [0, 0, 1, 1], [], []>} : vector<8x32xf32>, vector<32x64xf32>, vector<8x64xf32> -> vector<8x64xf32>
    %c0_16 = arith.constant 0 : index
    %c0_17 = arith.constant 0 : index
    %c0_18 = arith.constant 0 : index
    %22 = vector.load %arg8[%c0_16, %c0_17, %c0_18] : memref<1x1x64xbf16, #tpu.memory_space<vmem>>, vector<1x1x64xbf16>
    %23 = vector.shape_cast %22 : vector<1x1x64xbf16> to vector<1x64xbf16>
    %24 = arith.extf %23 : vector<1x64xbf16> to vector<1x64xf32>
    %25 = vector.broadcast %24 : vector<1x64xf32> to vector<8x64xf32>
    %26 = arith.addf %21, %25 : vector<8x64xf32>
    %27 = vector.extract_strided_slice %26 {offsets = [0, 0], sizes = [8, 32], strides = [1, 1]} : vector<8x64xf32> to vector<8x32xf32>
    %28 = vector.extract_strided_slice %26 {offsets = [0, 32], sizes = [8, 32], strides = [1, 1]} : vector<8x64xf32> to vector<8x32xf32>
    %29 = vector.extract_strided_slice %17 {offsets = [0, 0], sizes = [8, 8], strides = [1, 1]} : vector<8x32xf32> to vector<8x8xf32>
    %30 = vector.extract_strided_slice %27 {offsets = [0, 0], sizes = [8, 8], strides = [1, 1]} : vector<8x32xf32> to vector<8x8xf32>
    %cst_19 = arith.constant dense<0.000000e+00> : vector<8x8xf32>
    %31 = tpu.matmul %29, %30, %cst_19 {dimension_numbers = #tpu.dot_dimension_numbers<[1], [1], [0], [0], [0, 0, 1, 0], [], []>} : vector<8x8xf32>, vector<8x8xf32>, vector<8x8xf32> -> vector<8x8xf32>
    %cst_20 = arith.constant dense<0xFF800000> : vector<8xf32>
    %32 = vector.multi_reduction <maximumf>, %31, %cst_20 [1] : vector<8x8xf32> to vector<8xf32>
    %33 = vector.shape_cast %32 : vector<8xf32> to vector<8x1xf32>
    %34 = vector.broadcast %33 : vector<8x1xf32> to vector<8x8xf32>
    %35 = arith.subf %31, %34 : vector<8x8xf32>
    %36 = math.exp %35 : vector<8x8xf32>
    %cst_21 = arith.constant dense<0.000000e+00> : vector<8xf32>
    %37 = vector.multi_reduction <add>, %36, %cst_21 [1] : vector<8x8xf32> to vector<8xf32>
    %38 = vector.shape_cast %37 : vector<8xf32> to vector<8x1xf32>
    %cst_22 = arith.constant 1.000000e+00 : f32
    %39 = vector.broadcast %cst_22 : f32 to vector<8x1xf32>
    %40 = arith.divf %39, %38 : vector<8x1xf32>
    %41 = vector.broadcast %40 : vector<8x1xf32> to vector<8x8xf32>
    %42 = arith.mulf %36, %41 : vector<8x8xf32>
    %43 = vector.extract_strided_slice %28 {offsets = [0, 0], sizes = [8, 8], strides = [1, 1]} : vector<8x32xf32> to vector<8x8xf32>
    %cst_23 = arith.constant dense<0.000000e+00> : vector<8x8xf32>
    %44 = tpu.matmul %42, %43, %cst_23 {dimension_numbers = #tpu.dot_dimension_numbers<[1], [0], [0], [1], [0, 0, 1, 1], [], []>} : vector<8x8xf32>, vector<8x8xf32>, vector<8x8xf32> -> vector<8x8xf32>
    %45 = vector.extract_strided_slice %17 {offsets = [0, 8], sizes = [8, 8], strides = [1, 1]} : vector<8x32xf32> to vector<8x8xf32>
    %46 = vector.extract_strided_slice %27 {offsets = [0, 8], sizes = [8, 8], strides = [1, 1]} : vector<8x32xf32> to vector<8x8xf32>
    %cst_24 = arith.constant dense<0.000000e+00> : vector<8x8xf32>
    %47 = tpu.matmul %45, %46, %cst_24 {dimension_numbers = #tpu.dot_dimension_numbers<[1], [1], [0], [0], [0, 0, 1, 0], [], []>} : vector<8x8xf32>, vector<8x8xf32>, vector<8x8xf32> -> vector<8x8xf32>
    %cst_25 = arith.constant dense<0xFF800000> : vector<8xf32>
    %48 = vector.multi_reduction <maximumf>, %47, %cst_25 [1] : vector<8x8xf32> to vector<8xf32>
    %49 = vector.shape_cast %48 : vector<8xf32> to vector<8x1xf32>
    %50 = vector.broadcast %49 : vector<8x1xf32> to vector<8x8xf32>
    %51 = arith.subf %47, %50 : vector<8x8xf32>
    %52 = math.exp %51 : vector<8x8xf32>
    %cst_26 = arith.constant dense<0.000000e+00> : vector<8xf32>
    %53 = vector.multi_reduction <add>, %52, %cst_26 [1] : vector<8x8xf32> to vector<8xf32>
    %54 = vector.shape_cast %53 : vector<8xf32> to vector<8x1xf32>
    %cst_27 = arith.constant 1.000000e+00 : f32
    %55 = vector.broadcast %cst_27 : f32 to vector<8x1xf32>
    %56 = arith.divf %55, %54 : vector<8x1xf32>
    %57 = vector.broadcast %56 : vector<8x1xf32> to vector<8x8xf32>
    %58 = arith.mulf %52, %57 : vector<8x8xf32>
    %59 = vector.extract_strided_slice %28 {offsets = [0, 8], sizes = [8, 8], strides = [1, 1]} : vector<8x32xf32> to vector<8x8xf32>
    %cst_28 = arith.constant dense<0.000000e+00> : vector<8x8xf32>
    %60 = tpu.matmul %58, %59, %cst_28 {dimension_numbers = #tpu.dot_dimension_numbers<[1], [0], [0], [1], [0, 0, 1, 1], [], []>} : vector<8x8xf32>, vector<8x8xf32>, vector<8x8xf32> -> vector<8x8xf32>
    %61 = vector.extract_strided_slice %17 {offsets = [0, 16], sizes = [8, 8], strides = [1, 1]} : vector<8x32xf32> to vector<8x8xf32>
    %62 = vector.extract_strided_slice %27 {offsets = [0, 16], sizes = [8, 8], strides = [1, 1]} : vector<8x32xf32> to vector<8x8xf32>
    %cst_29 = arith.constant dense<0.000000e+00> : vector<8x8xf32>
    %63 = tpu.matmul %61, %62, %cst_29 {dimension_numbers = #tpu.dot_dimension_numbers<[1], [1], [0], [0], [0, 0, 1, 0], [], []>} : vector<8x8xf32>, vector<8x8xf32>, vector<8x8xf32> -> vector<8x8xf32>
    %cst_30 = arith.constant dense<0xFF800000> : vector<8xf32>
    %64 = vector.multi_reduction <maximumf>, %63, %cst_30 [1] : vector<8x8xf32> to vector<8xf32>
    %65 = vector.shape_cast %64 : vector<8xf32> to vector<8x1xf32>
    %66 = vector.broadcast %65 : vector<8x1xf32> to vector<8x8xf32>
    %67 = arith.subf %63, %66 : vector<8x8xf32>
    %68 = math.exp %67 : vector<8x8xf32>
    %cst_31 = arith.constant dense<0.000000e+00> : vector<8xf32>
    %69 = vector.multi_reduction <add>, %68, %cst_31 [1] : vector<8x8xf32> to vector<8xf32>
    %70 = vector.shape_cast %69 : vector<8xf32> to vector<8x1xf32>
    %cst_32 = arith.constant 1.000000e+00 : f32
    %71 = vector.broadcast %cst_32 : f32 to vector<8x1xf32>
    %72 = arith.divf %71, %70 : vector<8x1xf32>
    %73 = vector.broadcast %72 : vector<8x1xf32> to vector<8x8xf32>
    %74 = arith.mulf %68, %73 : vector<8x8xf32>
    %75 = vector.extract_strided_slice %28 {offsets = [0, 16], sizes = [8, 8], strides = [1, 1]} : vector<8x32xf32> to vector<8x8xf32>
    %cst_33 = arith.constant dense<0.000000e+00> : vector<8x8xf32>
    %76 = tpu.matmul %74, %75, %cst_33 {dimension_numbers = #tpu.dot_dimension_numbers<[1], [0], [0], [1], [0, 0, 1, 1], [], []>} : vector<8x8xf32>, vector<8x8xf32>, vector<8x8xf32> -> vector<8x8xf32>
    %77 = vector.extract_strided_slice %17 {offsets = [0, 24], sizes = [8, 8], strides = [1, 1]} : vector<8x32xf32> to vector<8x8xf32>
    %78 = vector.extract_strided_slice %27 {offsets = [0, 24], sizes = [8, 8], strides = [1, 1]} : vector<8x32xf32> to vector<8x8xf32>
    %cst_34 = arith.constant dense<0.000000e+00> : vector<8x8xf32>
    %79 = tpu.matmul %77, %78, %cst_34 {dimension_numbers = #tpu.dot_dimension_numbers<[1], [1], [0], [0], [0, 0, 1, 0], [], []>} : vector<8x8xf32>, vector<8x8xf32>, vector<8x8xf32> -> vector<8x8xf32>
    %cst_35 = arith.constant dense<0xFF800000> : vector<8xf32>
    %80 = vector.multi_reduction <maximumf>, %79, %cst_35 [1] : vector<8x8xf32> to vector<8xf32>
    %81 = vector.shape_cast %80 : vector<8xf32> to vector<8x1xf32>
    %82 = vector.broadcast %81 : vector<8x1xf32> to vector<8x8xf32>
    %83 = arith.subf %79, %82 : vector<8x8xf32>
    %84 = math.exp %83 : vector<8x8xf32>
    %cst_36 = arith.constant dense<0.000000e+00> : vector<8xf32>
    %85 = vector.multi_reduction <add>, %84, %cst_36 [1] : vector<8x8xf32> to vector<8xf32>
    %86 = vector.shape_cast %85 : vector<8xf32> to vector<8x1xf32>
    %cst_37 = arith.constant 1.000000e+00 : f32
    %87 = vector.broadcast %cst_37 : f32 to vector<8x1xf32>
    %88 = arith.divf %87, %86 : vector<8x1xf32>
    %89 = vector.broadcast %88 : vector<8x1xf32> to vector<8x8xf32>
    %90 = arith.mulf %84, %89 : vector<8x8xf32>
    %91 = vector.extract_strided_slice %28 {offsets = [0, 24], sizes = [8, 8], strides = [1, 1]} : vector<8x32xf32> to vector<8x8xf32>
    %cst_38 = arith.constant dense<0.000000e+00> : vector<8x8xf32>
    %92 = tpu.matmul %90, %91, %cst_38 {dimension_numbers = #tpu.dot_dimension_numbers<[1], [0], [0], [1], [0, 0, 1, 1], [], []>} : vector<8x8xf32>, vector<8x8xf32>, vector<8x8xf32> -> vector<8x8xf32>
    %93 = tpu.concatenate %44, %60, %76, %92 in 1 : vector<8x8xf32>, vector<8x8xf32>, vector<8x8xf32>, vector<8x8xf32> -> vector<8x32xf32>
    %c0_39 = arith.constant 0 : index
    %c0_40 = arith.constant 0 : index
    %94 = vector.load %arg14[%c0_39, %c0_40] : memref<8x32xf32, #tpu.memory_space<vmem>>, vector<8x32xf32>
    %c0_41 = arith.constant 0 : index
    %c0_42 = arith.constant 0 : index
    %c0_43 = arith.constant 0 : index
    %95 = vector.load %arg9[%c0_41, %c0_42, %c0_43] : memref<1x32x32xbf16, #tpu.memory_space<vmem>>, vector<1x32x32xbf16>
    %96 = vector.shape_cast %95 : vector<1x32x32xbf16> to vector<32x32xbf16>
    %97 = arith.extf %96 : vector<32x32xbf16> to vector<32x32xf32>
    %cst_44 = arith.constant dense<0.000000e+00> : vector<8x32xf32>
    %98 = tpu.matmul %93, %97, %cst_44 {dimension_numbers = #tpu.dot_dimension_numbers<[1], [0], [0], [1], [0, 0, 1, 1], [], []>} : vector<8x32xf32>, vector<32x32xf32>, vector<8x32xf32> -> vector<8x32xf32>
    %99 = arith.addf %94, %98 : vector<8x32xf32>
    %c0_45 = arith.constant 0 : index
    %c0_46 = arith.constant 0 : index
    %100 = vector.load %arg14[%c0_45, %c0_46] : memref<8x32xf32, #tpu.memory_space<vmem>>, vector<8x32xf32>
    tpu.vector_store %arg14[%c0_45, %c0_46], %99 {strides = array<i32>} : memref<8x32xf32, #tpu.memory_space<vmem>>, vector<8x32xf32>,
    %c0_i32_47 = arith.constant 0 : i32
    %101 = arith.cmpi eq, %arg2, %c0_i32_47 : i32
    %102 = arith.extui %101 : i1 to i32
    %c0_i32_48 = arith.constant 0 : i32
    %103 = arith.cmpi ne, %102, %c0_i32_48 : i32
    scf.if %103 {
      %c0_49 = arith.constant 0 : index
      %c0_50 = arith.constant 0 : index
      %c0_51 = arith.constant 0 : index
      %104 = vector.load %arg3[%c0_49, %c0_50, %c0_51] : memref<1x8x32xbf16, #tpu.memory_space<vmem>>, vector<1x8x32xbf16>
      %105 = vector.shape_cast %104 : vector<1x8x32xbf16> to vector<8x32xbf16>
      %106 = arith.extf %105 : vector<8x32xbf16> to vector<8x32xf32>
      %c0_52 = arith.constant 0 : index
      %c0_53 = arith.constant 0 : index
      %107 = vector.load %arg14[%c0_52, %c0_53] : memref<8x32xf32, #tpu.memory_space<vmem>>, vector<8x32xf32>
      %108 = arith.addf %106, %107 : vector<8x32xf32>
      %c0_54 = arith.constant 0 : index
      %c0_55 = arith.constant 0 : index
      %109 = vector.load %arg10[%c0_54, %c0_55] : memref<1x32xbf16, #tpu.memory_space<vmem>>, vector<1x32xbf16>
      %110 = arith.extf %109 : vector<1x32xbf16> to vector<1x32xf32>
      %111 = vector.broadcast %110 : vector<1x32xf32> to vector<8x32xf32>
      %112 = arith.addf %108, %111 : vector<8x32xf32>
      %c0_56 = arith.constant 0 : index
      %c0_57 = arith.constant 0 : index
      %113 = vector.load %arg11[%c0_56, %c0_57] : memref<1x32xf32, #tpu.memory_space<vmem>>, vector<1x32xf32>
      %c0_58 = arith.constant 0 : index
      %c0_59 = arith.constant 0 : index
      %114 = vector.load %arg12[%c0_58, %c0_59] : memref<1x32xf32, #tpu.memory_space<vmem>>, vector<1x32xf32>
      %cst_60 = arith.constant dense<0.000000e+00> : vector<8xf32>
      %115 = vector.multi_reduction <add>, %112, %cst_60 [1] : vector<8x32xf32> to vector<8xf32>
      %116 = vector.shape_cast %115 : vector<8xf32> to vector<8x1xf32>
      %cst_61 = arith.constant 3.200000e+01 : f32
      %117 = vector.broadcast %cst_61 : f32 to vector<8x1xf32>
      %118 = arith.divf %116, %117 : vector<8x1xf32>
      %119 = vector.broadcast %118 : vector<8x1xf32> to vector<8x32xf32>
      %120 = arith.subf %112, %119 : vector<8x32xf32>
      %121 = arith.mulf %120, %120 : vector<8x32xf32>
      %cst_62 = arith.constant dense<0.000000e+00> : vector<8xf32>
      %122 = vector.multi_reduction <add>, %121, %cst_62 [1] : vector<8x32xf32> to vector<8xf32>
      %123 = vector.shape_cast %122 : vector<8xf32> to vector<8x1xf32>
      %cst_63 = arith.constant 3.200000e+01 : f32
      %124 = vector.broadcast %cst_63 : f32 to vector<8x1xf32>
      %125 = arith.divf %123, %124 : vector<8x1xf32>
      %126 = vector.broadcast %118 : vector<8x1xf32> to vector<8x32xf32>
      %127 = arith.subf %112, %126 : vector<8x32xf32>
      %cst_64 = arith.constant 9.99999974E-6 : f32
      %128 = vector.broadcast %cst_64 : f32 to vector<8x1xf32>
      %129 = arith.addf %125, %128 : vector<8x1xf32>
      %130 = math.rsqrt %129 : vector<8x1xf32>
      %131 = vector.broadcast %130 : vector<8x1xf32> to vector<8x32xf32>
      %132 = arith.mulf %127, %131 : vector<8x32xf32>
      %133 = vector.broadcast %113 : vector<1x32xf32> to vector<8x32xf32>
      %134 = arith.mulf %132, %133 : vector<8x32xf32>
      %135 = vector.broadcast %114 : vector<1x32xf32> to vector<8x32xf32>
      %136 = arith.addf %134, %135 : vector<8x32xf32>
      %137 = arith.truncf %136 : vector<8x32xf32> to vector<8x32xbf16>
      %c0_65 = arith.constant 0 : index
      %c0_66 = arith.constant 0 : index
      %c0_67 = arith.constant 0 : index
      %138 = vector.load %arg13[%c0_65, %c0_66, %c0_67] : memref<1x8x32xbf16, #tpu.memory_space<vmem>>, vector<1x8x32xbf16>
      %139 = vector.shape_cast %138 : vector<1x8x32xbf16> to vector<8x32xbf16>
      %140 = vector.shape_cast %137 : vector<8x32xbf16> to vector<1x8x32xbf16>
      tpu.vector_store %arg13[%c0_65, %c0_66, %c0_67], %140 {strides = array<i32>} : memref<1x8x32xbf16, #tpu.memory_space<vmem>>, vector<1x8x32xbf16>,
    } else {
    }
    return
  }
  func.func @transform_0(%arg0: i32, %arg1: i32, %arg2: i32) -> (i32, i32, i32) {
    %c0_i32 = arith.constant 0 : i32
    %c0_i32_0 = arith.constant 0 : i32
    return %arg0, %arg1, %c0_i32 : i32, i32, i32
  }
  func.func @transform_1(%arg0: i32, %arg1: i32, %arg2: i32) -> (i32, i32, i32) {
    %c0_i32 = arith.constant 0 : i32
    %c0_i32_0 = arith.constant 0 : i32
    %c0_i32_1 = arith.constant 0 : i32
    return %arg0, %c0_i32, %c0_i32_0 : i32, i32, i32
  }
  func.func @transform_2(%arg0: i32, %arg1: i32, %arg2: i32) -> (i32, i32, i32) {
    %c0_i32 = arith.constant 0 : i32
    %c0_i32_0 = arith.constant 0 : i32
    %c0_i32_1 = arith.constant 0 : i32
    return %arg2, %c0_i32, %c0_i32_0 : i32, i32, i32
  }
  func.func @transform_3(%arg0: i32, %arg1: i32, %arg2: i32) -> (i32, i32, i32) {
    %c0_i32 = arith.constant 0 : i32
    %c0_i32_0 = arith.constant 0 : i32
    %c0_i32_1 = arith.constant 0 : i32
    return %arg2, %c0_i32, %c0_i32_0 : i32, i32, i32
  }
  func.func @transform_4(%arg0: i32, %arg1: i32, %arg2: i32) -> (i32, i32, i32) {
    %c0_i32 = arith.constant 0 : i32
    %c0_i32_0 = arith.constant 0 : i32
    %c0_i32_1 = arith.constant 0 : i32
    return %arg2, %c0_i32, %c0_i32_0 : i32, i32, i32
  }
  func.func @transform_5(%arg0: i32, %arg1: i32, %arg2: i32) -> (i32, i32, i32) {
    %c0_i32 = arith.constant 0 : i32
    %c0_i32_0 = arith.constant 0 : i32
    %c0_i32_1 = arith.constant 0 : i32
    return %arg2, %c0_i32, %c0_i32_0 : i32, i32, i32
  }
  func.func @transform_6(%arg0: i32, %arg1: i32, %arg2: i32) -> (i32, i32, i32) {
    %c0_i32 = arith.constant 0 : i32
    %c0_i32_0 = arith.constant 0 : i32
    %c0_i32_1 = arith.constant 0 : i32
    return %arg2, %c0_i32, %c0_i32_0 : i32, i32, i32
  }
  func.func @transform_7(%arg0: i32, %arg1: i32, %arg2: i32) -> (i32, i32) {
    %c0_i32 = arith.constant 0 : i32
    %c0_i32_0 = arith.constant 0 : i32
    %c0_i32_1 = arith.constant 0 : i32
    return %c0_i32, %c0_i32_0 : i32, i32
  }
  func.func @transform_8(%arg0: i32, %arg1: i32, %arg2: i32) -> (i32, i32) {
    %c0_i32 = arith.constant 0 : i32
    %c0_i32_0 = arith.constant 0 : i32
    %c0_i32_1 = arith.constant 0 : i32
    return %c0_i32, %c0_i32_0 : i32, i32
  }
  func.func @transform_9(%arg0: i32, %arg1: i32, %arg2: i32) -> (i32, i32) {
    %c0_i32 = arith.constant 0 : i32
    %c0_i32_0 = arith.constant 0 : i32
    %c0_i32_1 = arith.constant 0 : i32
    return %c0_i32, %c0_i32_0 : i32, i32
  }
  func.func @transform_10(%arg0: i32, %arg1: i32, %arg2: i32) -> (i32, i32, i32) {
    %c0_i32 = arith.constant 0 : i32
    %c0_i32_0 = arith.constant 0 : i32
    return %arg0, %arg1, %c0_i32 : i32, i32, i32
  }
}

</mosaic_0001>

<bundles_post_ra>
// kernel: tpu_custom_call.1
= control target key start
LH: loop header
LB: loop body
LE: loop exit
PB: predicated region body
PF: predicated region fallthrough
CT: control target
= control target key end

     0   :  { %s1979_s0 = inlined_call_operand.hbm [shape: bf16[2,8,32], index: 0, kind: input, shape index: {}]   ;;  %s1980_s1 = inlined_call_operand.hbm [shape: bf16[2,8,32], index: 1, kind: input, shape index: {}]   ;;  %s1981_s2 = inlined_call_operand.hbm [shape: bf16[1,32,32], index: 2, kind: input, shape index: {}]   ;;  %s1982_s3 = inlined_call_operand.vmem [shape: bf16[1,1,32], index: 3, kind: input, shape index: {}]   ;;  %s1983_s4 = inlined_call_operand.hbm [shape: bf16[1,32,64], index: 4, kind: input, shape index: {}]   ;;  %s1984_s5 = inlined_call_operand.vmem [shape: bf16[1,1,64], index: 5, kind: input, shape index: {}]   ;;  %s1985_s6 = inlined_call_operand.hbm [shape: bf16[1,32,32], index: 6, kind: input, shape index: {}]   ;;  %s1986_s7 = inlined_call_operand.vmem [shape: bf16[1,32], index: 7, kind: input, shape index: {}]   ;;  %s1987_s8 = inlined_call_operand.vmem [shape: f32[1,32], index: 8, kind: input, shape index: {}]   ;;  %s1988_s9 = inlined_call_operand.vmem [shape: f32[1,32], index: 9, kind: input, shape index: {}]   ;;  %s1989_s10 = inlined_call_operand.hbm [shape: bf16[2,8,32], index: 10, kind: output, shape index: {}]  }
   0x1   :  { %1998 = sst [smem:[#allocation25_spill]] %s1981_s2 }
   0x2   :  { %1999 = sst [smem:[#allocation26_spill]] %s1983_s4 }
   0x3   :  { %2000 = sst [smem:[#allocation27_spill]] %s1985_s6 }
   0x4   :  { %2001 = sst [smem:[#allocation28_spill]] %s1989_s10 }
   0x5   :  { %15 = vsyncpa [#allocation4], 0 }
   0x6   :  { %17 = vsyncpa [#allocation4 + $0x1], 0 }
   0x7   :  { %18 = vsyncpa [#allocation7], 0 }
   0x8   :  { %20 = vsyncpa [#allocation7 + $0x1], 0 }
   0x9   :  { %21 = vsyncpa [#allocation10], 0 }
   0xa   :  { %22 = vsyncpa [#allocation5], 0 }
   0xb   :  { %24 = vsyncpa [#allocation5 + $0x1], 0  ;;  %s1738_s13 = smov 0   ;;  %s1740_s14 = smov 0  }
   0xc   :  { %s1742_s15 = smov 0   ;;  %s1744_s16 = smov 0  }
   0xd   :  { %s1746_s17 = smov 0   ;;  %s1748_s18 = smov 0  }
   0xe LB: > { %2002 = sst [smem:[#allocation18_spill]] %s1644_s13  ;;  %s1769_s19 = sadd.s32 4294967295, %s1664_s18   ;;  %s1664_s18 = sphi %s1748_s18, %s30_s18   ;;  %s1660_s17 = sphi %s1746_s17, %s2025_s17   ;;  %s1656_s16 = sphi %s1744_s16, %s2024_s16   ;;  %s1652_s15 = sphi %s1742_s15, %s2023_s15   ;;  %s1648_s14 = sphi %s1740_s14, %s2027_s14   ;;  %s1644_s13 = sphi %s1738_s13, %s2026_s13  }
   0xf   : > { %2003 = sst [smem:[#allocation19_spill]] %s1652_s15  ;;  %p1222_p0 = scmp.ge.s32.totalorder %s1664_s18, 1 }
  0x10   : > { %2004 = sst [smem:[#allocation20_spill]] %s1660_s17  ;;  %p72_p1 = scmp.eq.s32.totalorder %s1769_s19, 0 }
  0x11   : > { %p329_p2 = scmp.lt.s32.totalorder %s1664_s18, 3  ;;  %s2005_s2 = sld [smem:[#allocation25_spill]] }
  0x12   : > { %s1666_s24 = smov [#allocation8]   ;;  %p1228_p6 = scmp.ge.s32.totalorder %s1664_s18, 2 }
  0x13   : > { %p1777_p3 = pnand %p1222_p0, %p329_p2  ;;  %s345_s25 = sshll.u32 %s1666_s24, 4  ;;  %s346_s25 = int_to_ptr.vmem [resolvable:$true] %s345_s25 }
  0x14   : > { %s2008_s4 = sld [smem:[#allocation26_spill]]  ;;  %s1667_s30 = smov 64  }
  0x15   : > { %p1304_p4 = pneg %p1777_p3  ;;  %s1668_s11 = smov 4  }
  0x16   : > { %s1669_s12 = smov [#allocation9]   ;;  %s2009_s6 = sld [smem:[#allocation27_spill]] }
  0x17   : > { %s343_s22 = sshll.u32 %s2005_s2, 4  ;;  %p1785_p5 = pnand %p1304_p4, %p72_p1  ;;  %s344_s22 = int_to_ptr.hbm [resolvable:$true] %s343_s22 }
  0x18   : > { %s368_s20 = sshll.u32 %s1669_s12, 4  ;;  %s1670_s28 = smov [#allocation11]   ;;  %s369_s20 = int_to_ptr.vmem [resolvable:$true] %s368_s20 }
  0x19   : > { %1307 = dma.hbm_to_vmem [thread:$0]  (!%p1785_p5), %s344_s22, 256, %s346_s25, [#allocation7], %s1667_s30, %s1667_s30, %s1668_s11  }
  0x1a   : > { %s366_s29 = sshll.u32 %s2008_s4, 4  ;;  %s391_s2 = sshll.u32 %s1670_s28, 4  ;;  %s367_s29 = int_to_ptr.hbm [resolvable:$true] %s366_s29  ;;  %s392_s2 = int_to_ptr.vmem [resolvable:$true] %s391_s2 }
  0x1b   : > { %1310 = dma.hbm_to_vmem [thread:$0]  (!%p1785_p5), %s367_s29, 256, %s369_s20, [#allocation10], %s1667_s30, %s1667_s30, %s1668_s11  }
  0x1c   : > { %s389_s27 = sshll.u32 %s2009_s6, 4  ;;  %s1221_s22 = sadd.s32 4294967294, %s1664_s18   ;;  %s390_s27 = int_to_ptr.hbm [resolvable:$true] %s389_s27 }
  0x1d   : > { %1313 = dma.hbm_to_vmem [thread:$0]  (!%p1785_p5), %s390_s27, 256, %s392_s2, [#allocation10], %s1667_s30, %s1667_s30, %s1668_s11  }
  0x1e   : > { %s49_s25 = sadd.s32 1, %s1660_s17  ;;  %s58_s12 = sadd.s32 1, %s1652_s15 }
  0x1f   : > { %p51_p7 = scmp.ge.s32.totalorder %s49_s25, 2  ;;  %p65_p8 = scmp.ne.s32.totalorder %s1652_s15, %s1648_s14 }
  0x20   : > { %p66_p9 = scmp.eq.s32.totalorder %s1664_s18, 0  ;;  %p71_p10 = scmp.ne.s32.totalorder %s1648_s14, %s1644_s13 }
  0x21   : > { %s2029_s25 = smov (%p51_p7, %s49_s25), 0  ;;  %p316_p13 = scmp.eq.s32.totalorder %s1769_s19, 1 }
  0x22   : > { %2010 = sst [smem:[#allocation21_spill]] %s2029_s25  ;;  %p1812_p11 = por %p66_p9, %p65_p8 }
  0x23   : > { %p1818_p12 = por %p72_p1, %p71_p10  ;;  %s53_s26 = ssub.s32 %s1660_s17, %s2029_s25 }
  0x24   : > { %p56_p0 = scmp.eq.s32.totalorder %s53_s26, 0  ;;  %p322_p2 = scmp.eq.s32.totalorder %s1221_s22, 1 }
  0x25   : > { %p1825_p4 = por %p316_p13, %p65_p8  ;;  %p1328_p5 = scmp.lt.s32.totalorder %s1664_s18, 2 }
  0x26   : > { %s1831_s11 = scalar_select %p56_p0, %s1652_s15, %s58_s12  }
  0x27   : > { %s2013_s30 = scalar_select %p1825_p4, 1, 0 }
  0x28   : > { %2015 = sst [smem:[#allocation23_spill]] %s1831_s11  ;;  %p1833_p7 = por %p322_p2, %p71_p10 }
  0x29   : > { %2014 = sst [smem:[#allocation22_spill]] %s2013_s30  ;;  %s414_s21 = sand.u32 1, %s1652_s15  }
  0x2a   : > { %s2016_s20 = scalar_select %p1833_p7, 1, 0 }
  0x2b   : > { %s1229_s24 = sshll.u32 %s414_s21, 2  ;;  %s1230_s27 = sshll.u32 %s1660_s17, 2 }
  0x2c   : > { %2017 = sst [smem:[#allocation24_spill]] %s2016_s20  ;;  %s423_s26 = scalar_lea.hbm %s1979_s0, %s1230_s27 }
  0x2d   : > { %s418_s22 = scalar_lea.vmem [#allocation3], %s1229_s24  ;;  %s425_s25 = sshll.u32 %s423_s26, 4  ;;  %s426_s25 = int_to_ptr.hbm [resolvable:$true] %s425_s25 }
  0x2e   : > { %s427_s6 = sshll.u32 %s418_s22, 4  ;;  %p1315_p8 = pnand %p1328_p5, %p1812_p11  ;;  %s428_s6 = int_to_ptr.vmem [resolvable:$true] %s427_s6 }
  0x2f   : > { %s442_s13 = scalar_lea.hbm %s1980_s1, %s1230_s27  ;;  %s434_s30 = sand.u32 1, %s1664_s18  }
  0x30   : > { %s415_s20 = scalar_lea.sflag [#allocation4], %s414_s21  ;;  %s444_s15 = sshll.u32 %s442_s13, 4  ;;  %s445_s15 = int_to_ptr.hbm [resolvable:$true] %s444_s15 }
  0x31   : > { %1317 = dma.hbm_to_vmem [thread:$0]  (!%p1315_p8), %s426_s25, 64, %s428_s6, %s415_s20  }
  0x32   : > { %s438_s17 = scalar_lea.vmem [#allocation6], %s1229_s24  ;;  %s435_s4 = scalar_lea.sflag [#allocation7], %s434_s30 }
  0x33   : > { %s446_s10 = sshll.u32 %s438_s17, 4  ;;  %455 = sbr.rel (%p1777_p3) target bundleno = 1682 (0x692), region = 60  ;;  %s447_s10 = int_to_ptr.vmem [resolvable:$true] %s446_s10 }
  0x34   : > { %1320 = dma.hbm_to_vmem [thread:$0]  (!%p1315_p8), %s445_s15, 64, %s447_s10, %s435_s4  }
  0x35   : > { %s1851_s29 = sand.u32 (!%p1777_p3), 1, %s1648_s14  }
  0x36   : > { %s1854_s11 = sshll.u32 (!%p1777_p3), %s1851_s29, 2  ;;  %s458_s6 = scalar_lea.sflag (!%p1777_p3), [#allocation4], %s1851_s29 }
  0x37   : > { %s461_s13 = scalar_lea.vmem (!%p1777_p3), [#allocation3], %s1854_s11 }
  0x38   : > { %1623 = dma.done.wait (%p1818_p12), %s458_s6, 64  }
  0x39   : > { %1625 = vsyncadd (%p1818_p12), %s458_s6, 4294967232  ;;  %s467_s10 = sand.u32 1, %s1769_s19   ;;  %s471_s17 = scalar_lea.vmem [#allocation6], %s1854_s11 }
  0x3a   : > { %s468_s15 = scalar_lea.sflag [#allocation7], %s467_s10 }
  0x3b   : > { %1627 = dma.done.wait (%p1818_p12), %s468_s15, 64  }
  0x3c   : > { %1629 = vsyncadd (%p1818_p12), %s468_s15, 4294967232 }
  0x3d   : > { %1631 = dma.done.wait (%p72_p1), [#allocation7], 256  }
  0x3e   : > { %1633 = vsyncadd (%p72_p1), [#allocation7], 4294967040 }
  0x3f   : > { %1635 = dma.done.wait (%p72_p1), [#allocation10], 512  }
  0x40   : > { %1637 = vsyncadd (%p72_p1), [#allocation10], 4294966784  ;;  %v1283_v0 = vld [vmem:[#allocation8 + $0x8] sm:$0xff]   ;;  %v1284_v1 = vld [vmem:[#allocation9 + $0x8] sm:$0xff]   ;;  %vm545_vm0 = vcmask 261120   ;;  %vm620_vm1 = vcmask 64512  }
  0x41   : > { %v1260_v2 = vld [vmem:[#allocation8] sm:$0xff]   ;;  %v1266_v3 = vunpack.c.h.bf16 %v1283_v0  ;;  %v1274_v4 = vunpack.c.h.bf16 %v1284_v1  ;;  %v1265_v5 = vunpack.c.l.bf16 %v1283_v0  ;;  %v1273_v6 = vunpack.c.l.bf16 %v1284_v1  ;;  %v1268_v7 = vld [vmem:[#allocation9] sm:$0xff]   ;;  %v549_v11 = vld [vmem:[%s471_s17] sm:$0xf]  ;;  %s1671_s30 = smov 96   ;;  %s1672_s20 = smov 120  }
  0x42   : > { %v1262_v8 = vunpack.c.h.bf16 %v1260_v2  ;;  %v1270_v9 = vunpack.c.h.bf16 %v1268_v7  ;;  %v547_v10 = vld [vmem:[%s461_s13] sm:$0xf]  ;;  %v1261_v12 = vunpack.c.l.bf16 %v1260_v2  ;;  %v1269_v13 = vunpack.c.l.bf16 %v1268_v7  ;;  %v559_v16 = vld [vmem:[%s1982_s3] sm:$0x1]  ;;  %s1673_s21 = smov 104   ;;  %s1674_s24 = smov 112  }
  0x43   : > { %578 = vmatpush.msra.mxu0 %v1266_v3  ;;  %612 = vmatpush.msra.mxu1 %v1274_v4  ;;  %v548_v14 = vunpack.c.l.bf16 %v547_v10  ;;  %v550_v15 = vunpack.c.l.bf16 %v549_v11  ;;  %v594_v17 = vld [vmem:[%s1984_s5] sm:$0x1]  ;;  %v560_v18 = vunpack.c.l.bf16 %v559_v16  ;;  %s1675_s27 = smov 72   ;;  %s1676_s28 = smov 80  }
  0x44   : > { %v595_v19 = vunpack.c.l.bf16 %v594_v17  ;;  %s1677_s26 = smov 88   ;;  %s1678_s22 = smov 16  }
  0x45   : > { %579 = vmatpush.msra.mxu0 %v1265_v5  ;;  %613 = vmatpush.msra.mxu1 %v1273_v6  ;;  %v561_v20 = vperm.slane %v560_v18, 0  ;;  %s1679_s12 = smov 8   ;;  %s1680_s4 = smov 24  }
  0x46   : > { %v596_v21 = vperm.slane %v595_v19, 0 }
  0x47   : > { %580 = vmatpush.msra.mxu0 %v1262_v8  ;;  %614 = vmatpush.msra.mxu1 %v1270_v9 }
  0x49   : > { %581 = vmatpush.msra.mxu0 %v1261_v12  ;;  %615 = vmatpush.msra.mxu1 %v1269_v13 }
  0x4a   : > { %1240 = vmatmul.msk.f32.vlgmr.msra.gmra.mxu0 %vm545_vm0, %v548_v14  ;;  %1241 = vmatmul.msk.f32.vlgmr.msra.gmra.mxu1 %vm545_vm0, %v550_v15 }
  0xc7   : > { %v583_v22 = vpop.f32.mrf.mxu0  ;;  %v617_v23 = vpop.f32.mrf.mxu1 }
  0xc8   : > { %v584_v24 = vadd.f32 %v583_v22, %v561_v20  ;;  %v1886_v25 = vadd.f32 %v617_v23, %v596_v21 }
  0xca   : > { %672 = vrot.lane.b32.xlu1 %v1886_v25, %s1671_s30  ;;  %1242 = vmatpush.xpose.msk.msra.mxu2 %vm620_vm1, %v1886_v25  ;;  %s2018_s30 = sld [smem:[#allocation28_spill]] }
  0xcb   : > { %698 = vrot.lane.b32.xlu2 %v584_v24, %s1672_s20 }
  0xcd   : > { %1243 = vmatmul.msk.f32.vlgmr.msra.gmra.mxu2 %vm620_vm1, %v584_v24 }
  0xd2   : > { %700 = vrot.lane.b32.xlu1 %v1886_v25, %s1672_s20 }
  0xd3   : > { %858 = vrot.lane.b32.xlu2 %v1886_v25, %s1673_s21 }
  0xda   : > { %779 = vrot.lane.b32.xlu1 %v1886_v25, %s1674_s24 }
  0xdb   : > { %777 = vrot.lane.b32.xlu2 %v584_v24, %s1674_s24  ;;  %s534_s24 = scalar_lea.vmem [#allocation12], %s1854_s11  ;;  %s1590_s11 = scalar_lea.hbm %s2018_s30, 8 }
 0x125   : > { %v699_v26 = vpop.permute.xlu2 %698 }
 0x12d   : > { %v859_v29 = vpop.permute.xlu2 %858 }
 0x135   : > { %v778_v31 = vpop.permute.xlu2 %777 }
 0x13c   : > { %v673_v27 = vpop.permute.xlu1 %672 }
 0x13d   : > { %693 = vmatpush.msra.mxu3 %v673_v27 }
 0x144   : > { %v701_v28 = vpop.permute.xlu1 %700 }
 0x145   : > { %1245 = vmatpush.xpose.msk.msrb.mxu3 %vm620_vm1, %v701_v28 }
 0x14c   : > { %v780_v30 = vpop.permute.xlu1 %779 }
 0x14d   : > { %1248 = vmatpush.xpose.msk.msrb.mxu0 %vm620_vm1, %v780_v30 }
 0x150   : > { %v644_v32 = vpop.f32.mrf.mxu2  ;;  %1249 = vmatmul.msk.f32.vlgmr.msrb.gmra.mxu0 %vm620_vm1, %v778_v31 }
 0x151   : > { %v647_v33 = vsel %vm620_vm1, %v644_v32, -inf }
 0x152   : > { %648 = vmax.xlane.f32.xlu0 %v647_v33 }
 0x1c5   : > { %v649_v34 = vpop.xlane.xlu0 %648 }
 0x1c6   : > { %v650_v35 = vsub.f32 %v644_v32, %v649_v34 }
 0x1c8   : > { %v651_v36 = vmul.f32 1.442695, %v650_v35 }
 0x1ca   : > { %1400 = vpow2.f32 %v651_v36 }
 0x1cd   : > { %v802_v39 = vpop.f32.mrf.mxu0 }
 0x1ce   : > { %v805_v40 = vsel %vm620_vm1, %v802_v39, -inf }
 0x1d0   : > { %v1401_v37 = vpop.eup %1400 }
 0x1d1   : > { %v653_v38 = vsel %vm620_vm1, %v1401_v37, 0.0 }
 0x1d2   : > { %654 = vadd.xlane.f32.xlu0 %v653_v38 }
 0x1e6   : > { %856 = vrot.lane.b32.xlu0 %v584_v24, %s1673_s21 }
 0x210   : > { %806 = vmax.xlane.f32.xlu0 %v805_v40 }
 0x224   : > { %909 = vrot.lane.b32.xlu0 %v1886_v25, %s1675_s27 }
 0x245   : > { %v655_v41 = vpop.xlane.xlu0 %654 }
 0x246   : > { %1402 = vrcp.f32 %v655_v41  ;;  %v667_v45 = vand.u32 2147483648, %v655_v41  ;;  %v665_v47 = vand.u32 2147483647, %v655_v41  ;;  %vm661_vm3 = vweird.f32 %v655_v41 }
 0x248   : > { %v668_v49 = vor.u32 1.1754944e-38, %v667_v45  ;;  %vm666_vm5 = vcmp.eq.f32.partialorder %v665_v47, 8.507059e+37 }
 0x24c   : > { %v1403_v42 = vpop.eup %1402 }
 0x24d   : > { %v657_v43 = vmul.f32 %v1403_v42, %v655_v41  ;;  %vm662_vm2 = vweird.f32 %v1403_v42 }
 0x24e   : > { %vm663_vm4 = vmor %vm661_vm3, %vm662_vm2 }
 0x24f   : > { %v658_v44 = vsub.f32 1.0, %v657_v43 }
 0x251   : > { %v659_v46 = vmul.f32 %v1403_v42, %v658_v44 }
 0x253   : > { %v660_v48 = vadd.f32 %v1403_v42, %v659_v46 }
 0x255   : > { %v664_v50 = vsel %vm663_vm4, %v1403_v42, %v660_v48  ;;  %vm948_vm4 = vcmask 130048  }
 0x256   : > { %v669_v51 = vsel %vm666_vm5, %v668_v49, %v664_v50  ;;  %vm950_vm5 = vcmask 195584  }
 0x257   : > { %v671_v52 = vmul.f32 %v1401_v37, %v669_v51 }
 0x258   : > { %v857_v53 = vpop.permute.xlu0 %856 }
 0x259   : > { %1244 = vmatmul.msk.f32.vlgmr.msra.gmra.mxu3 %vm620_vm1, %v671_v52  ;;  %v1285_v52 = vld [vmem:[#allocation11 + $0x8] sm:$0xff]  }
 0x25a   : > { %1251 = vmatpush.xpose.msk.msra.mxu3 %vm620_vm1, %v859_v29 }
 0x261   : > { %1246 = vmatmul.msk.f32.vlgmr.msrb.gmra.mxu3 %vm620_vm1, %v699_v26 }
 0x269   : > { %1252 = vmatmul.msk.f32.vlgmr.msra.gmra.mxu3 %vm620_vm1, %v857_v53  ;;  %v1282_v53 = vunpack.c.h.bf16 %v1285_v52 }
 0x26b   : > { %976 = vmatpush.msra.mxu0 %v1282_v53 }
 0x283   : > { %v807_v55 = vpop.xlane.xlu0 %806 }
 0x284   : > { %v808_v56 = vsub.f32 %v802_v39, %v807_v55  ;;  %v1281_v55 = vunpack.c.l.bf16 %v1285_v52 }
 0x286   : > { %v809_v59 = vmul.f32 1.442695, %v808_v56  ;;  %977 = vmatpush.msra.mxu0 %v1281_v55  ;;  %v1276_v56 = vld [vmem:[#allocation11] sm:$0xff]  }
 0x288   : > { %1404 = vpow2.f32 %v809_v59  ;;  %v1681_v59 = vmov 0.0  }
 0x289   : > { %546 = vst.msk [vmem:[#allocation2] sm:$0xff] %vm545_vm0, %v1681_v59 }
 0x28e   : > { %v1405_v62 = vpop.eup %1404 }
 0x28f   : > { %v811_v63 = vsel %vm620_vm1, %v1405_v62, 0.0 }
 0x296   : > { %v910_v44 = vpop.permute.xlu0 %909 }
 0x2dc   : > { %v1906_v54 = vpop.f32.mrf.mxu3 }
 0x2e4   : > { %v723_v57 = vpop.f32.mrf.mxu3 }
 0x2e5   : > { %v726_v58 = vsel %vm620_vm1, %v723_v57, -inf }
 0x2e6   : > { %727 = vmax.xlane.f32.xlu1 %v726_v58  ;;  %v1277_v58 = vunpack.c.l.bf16 %v1276_v56 }
 0x2ec   : > { %v881_v60 = vpop.f32.mrf.mxu3 }
 0x2ed   : > { %v884_v61 = vsel %vm620_vm1, %v881_v60, -inf }
 0x2ee   : > { %885 = vmax.xlane.f32.xlu2 %v884_v61 }
 0x2f6   : > { %812 = vadd.xlane.f32.xlu2 %v811_v63 }
 0x359   : > { %v728_v0 = vpop.xlane.xlu1 %727 }
 0x35a   : > { %v729_v1 = vsub.f32 %v723_v57, %v728_v0  ;;  %v1278_v57 = vunpack.c.h.bf16 %v1276_v56 }
 0x35c   : > { %v730_v2 = vmul.f32 1.442695, %v729_v1  ;;  %978 = vmatpush.msra.mxu0 %v1278_v57 }
 0x35e   : > { %1406 = vpow2.f32 %v730_v2  ;;  %979 = vmatpush.msra.mxu0 %v1277_v58  ;;  %v952_v2 = vld [vmem:[#allocation2] sm:$0xff] }
 0x361   : > { %v886_v3 = vpop.xlane.xlu2 %885 }
 0x362   : > { %v887_v4 = vsub.f32 %v881_v60, %v886_v3 }
 0x364   : > { %v1407_v5 = vpop.eup %1406  ;;  %v888_v6 = vmul.f32 1.442695, %v887_v4 }
 0x365   : > { %v732_v7 = vsel %vm620_vm1, %v1407_v5, 0.0 }
 0x366   : > { %1408 = vpow2.f32 %v888_v6  ;;  %733 = vadd.xlane.f32.xlu2 %v732_v7  ;;  %v989_v6 = vld [vmem:[%s461_s13] sm:$0xf]  ;;  %s1256_s13 = sshll.u32 %s1656_s16, 2  ;;  %s1053_s16 = sshll.u32 %s534_s24, 4  ;;  %s1054_s16 = int_to_ptr.vmem [resolvable:$true] %s1053_s16 }
 0x367   : > { %s1051_s20 = scalar_lea.hbm %s2018_s30, %s1256_s13 }
 0x368   : > { %s1055_s27 = sshll.u32 %s1051_s20, 4  ;;  %s1056_s27 = int_to_ptr.hbm [resolvable:$true] %s1055_s27 }
 0x369   : > { %v813_v10 = vpop.xlane.xlu2 %812 }
 0x36a   : > { %1410 = vrcp.f32 %v813_v10  ;;  %v825_v16 = vand.u32 2147483648, %v813_v10  ;;  %vm819_vm7 = vweird.f32 %v813_v10  ;;  %v823_v17 = vand.u32 2147483647, %v813_v10 }
 0x36c   : > { %v1912_v8 = vpop.eup %1408  ;;  %v826_v20 = vor.u32 1.1754944e-38, %v825_v16  ;;  %vm824_vm9 = vcmp.eq.f32.partialorder %v823_v17, 8.507059e+37 }
 0x36d   : > { %v890_v9 = vsel %vm620_vm1, %v1912_v8, 0.0 }
 0x36e   : > { %891 = vadd.xlane.f32.xlu1 %v890_v9 }
 0x370   : > { %v1411_v11 = vpop.eup %1410 }
 0x371   : > { %v815_v12 = vmul.f32 %v1411_v11, %v813_v10  ;;  %vm820_vm6 = vweird.f32 %v1411_v11 }
 0x372   : > { %vm821_vm8 = vmor %vm819_vm7, %vm820_vm6 }
 0x373   : > { %v816_v13 = vsub.f32 1.0, %v815_v12 }
 0x375   : > { %v817_v14 = vmul.f32 %v1411_v11, %v816_v13  ;;  %v1682_v13 = vmov 32.0  }
 0x377   : > { %v818_v15 = vadd.f32 %v1411_v11, %v817_v14 }
 0x379   : > { %v822_v19 = vsel %vm821_vm8, %v1411_v11, %v818_v15  ;;  %vm1037_vm8 = vcmask 257024  }
 0x37a   : > { %v827_v21 = vsel %vm824_vm9, %v826_v20, %v822_v19 }
 0x37e   : > { %830 = vrot.lane.b32.xlu2 %v1886_v25, %s1676_s28  ;;  %s1040_s28 = scalar_lea.sflag [#allocation5], %s1851_s29 }
 0x387   : > { %751 = vrot.lane.b32.xlu1 %v1886_v25, %s1677_s26  ;;  %v829_v25 = vmul.f32 %v1405_v62, %v827_v21  ;;  %s1584_s26 = sshra.s32 %s1056_s27, 4  ;;  %s1585_s26 = int_to_ptr.hbm [resolvable:$true] %s1584_s26 }
 0x388   : > { %p1591_p10 = scmp.lt.s32.totalorder %s1585_s26, %s2018_s30 }
 0x3d9   : > { %v734_v18 = vpop.xlane.xlu2 %733 }
 0x3da   : > { %1412 = vrcp.f32 %v734_v18  ;;  %v746_v33 = vand.u32 2147483648, %v734_v18  ;;  %vm740_vm11 = vweird.f32 %v734_v18  ;;  %v744_v34 = vand.u32 2147483647, %v734_v18 }
 0x3dc   : > { %v747_v37 = vor.u32 1.1754944e-38, %v746_v33  ;;  %vm745_vm13 = vcmp.eq.f32.partialorder %v744_v34, 8.507059e+37  ;;  %v1398_v34 = vld [vmem:[%s1987_s8] ss:$0 sm:$0xff] }
 0x3e0   : > { %v1413_v22 = vpop.eup %1412 }
 0x3e1   : > { %v892_v23 = vpop.xlane.xlu1 %891  ;;  %v831_v24 = vpop.permute.xlu2 %830  ;;  %v736_v26 = vmul.f32 %v1413_v22, %v734_v18  ;;  %vm741_vm10 = vweird.f32 %v1413_v22 }
 0x3e2   : > { %1414 = vrcp.f32 %v892_v23  ;;  %851 = vmatpush.msrb.mxu1 %v831_v24  ;;  %vm742_vm12 = vmor %vm740_vm11, %vm741_vm10  ;;  %v904_v40 = vand.u32 2147483648, %v892_v23  ;;  %vm898_vm15 = vweird.f32 %v892_v23  ;;  %v902_v41 = vand.u32 2147483647, %v892_v23 }
 0x3e3   : > { %1250 = vmatmul.msk.f32.vlgmr.msrb.gmra.mxu1 %vm620_vm1, %v829_v25  ;;  %v737_v27 = vsub.f32 1.0, %v736_v26  ;;  %1416 = vrcp.f32 %v1682_v13 }
 0x3e4   : > { %v905_v46 = vor.u32 1.1754944e-38, %v904_v40  ;;  %vm903_vm3 = vcmp.eq.f32.partialorder %v902_v41, 8.507059e+37 }
 0x3e5   : > { %v738_v29 = vmul.f32 %v1413_v22, %v737_v27 }
 0x3e7   : > { %v739_v31 = vadd.f32 %v1413_v22, %v738_v29 }
 0x3e8   : > { %v1415_v28 = vpop.eup %1414 }
 0x3e9   : > { %v894_v30 = vmul.f32 %v1415_v28, %v892_v23  ;;  %v743_v36 = vsel %vm742_vm12, %v1413_v22, %v739_v31  ;;  %vm899_vm14 = vweird.f32 %v1415_v28  ;;  %v1417_v14 = vpop.eup %1416 }
 0x3ea   : > { %v748_v38 = vsel %vm745_vm13, %v747_v37, %v743_v36  ;;  %vm900_vm2 = vmor %vm898_vm15, %vm899_vm14  ;;  %v1003_v15 = vmul.f32 32.0, %v1417_v14  ;;  %v1399_v36 = vld [vmem:[%s1988_s9] ss:$0 sm:$0xff] }
 0x3eb   : > { %v895_v32 = vsub.f32 1.0, %v894_v30  ;;  %v750_v43 = vmul.f32 %v1407_v5, %v748_v38  ;;  %v993_v5 = vld [vmem:[%s1986_s7] sm:$0x1] }
 0x3ec   : > { %v994_v7 = vunpack.c.l.bf16 %v993_v5  ;;  %v1004_v16 = vsub.f32 1.0, %v1003_v15 }
 0x3ed   : > { %v896_v35 = vmul.f32 %v1415_v28, %v895_v32 }
 0x3ee   : > { %v995_v9 = vperm.slane %v994_v7, 0  ;;  %v1005_v17 = vmul.f32 %v1417_v14, %v1004_v16 }
 0x3ef   : > { %v897_v39 = vadd.f32 %v1415_v28, %v896_v35 }
 0x3f0   : > { %v1006_v18 = vadd.f32 %v1417_v14, %v1005_v17 }
 0x3f1   : > { %v901_v45 = vsel %vm900_vm2, %v1415_v28, %v897_v39 }
 0x3f2   : > { %v906_v47 = vsel %vm903_vm3, %v905_v46, %v901_v45 }
 0x3f3   : > { %v908_v48 = vmul.f32 %v1912_v8, %v906_v47  ;;  %v990_v8 = vunpack.c.l.bf16 %v989_v6 }
 0x3f9   : > { %v752_v42 = vpop.permute.xlu1 %751 }
 0x3fa   : > { %772 = vmatpush.msrb.mxu2 %v752_v42 }
 0x3fb   : > { %1247 = vmatmul.msk.f32.vlgmr.msrb.gmra.mxu2 %vm620_vm1, %v750_v43 }
 0x3fc   : > { %930 = vmatpush.msra.mxu2 %v910_v44 }
 0x403   : > { %1253 = vmatmul.msk.f32.vlgmr.msra.gmra.mxu2 %vm620_vm1, %v908_v48 }
 0x460   : > { %v853_v49 = vpop.f32.mrf.mxu1 }
 0x461   : > { %940 = vrot.lane.b32.xlu1 %v853_v49, %s1678_s22  ;;  %s1586_s22 = scalar_lea.hbm %s1585_s26, 4 }
 0x462   : > { %p1587_p1 = scmp.ne.s32.totalorder %s1585_s26, %s1586_s22  ;;  %p1592_p11 = scmp.lt.s32.totalorder %s1590_s11, %s1586_s22 }
 0x464   : > { %p1588_p3 = pnand %p1587_p1, %p1825_p4  ;;  %p1593_p12 = por %p1592_p11, %p1591_p10 }
 0x466   : > { %p1589_p9 = pneg %p1588_p3 }
 0x468   : > { %p1594_p13 = pnand %p1593_p12, %p1589_p9 }
 0x47e   : > { %v774_v50 = vpop.f32.mrf.mxu2 }
 0x47f   : > { %936 = vrot.lane.b32.xlu0 %v774_v50, %s1679_s12 }
 0x486   : > { %v932_v51 = vpop.f32.mrf.mxu2 }
 0x487   : > { %944 = vrot.lane.b32.xlu2 %v932_v51, %s1680_s4 }
 0x4d3   : > { %v941_v61 = vpop.permute.xlu1 %940 }
 0x4e1   : > { %v945_v63 = vpop.permute.xlu2 %944 }
 0x4f1   : > { %v937_v60 = vpop.permute.xlu0 %936 }
 0x4f2   : > { %v947_v62 = vsel %vm620_vm1, %v1906_v54, %v937_v60  ;;  %vm1007_vm1 = vweird.f32 %v1417_v14 }
 0x4f3   : > { %v949_v0 = vsel %vm948_vm4, %v947_v62, %v941_v61  ;;  %v1008_v19 = vsel %vm1007_vm1, %v1417_v14, %v1006_v18 }
 0x4f4   : > { %v951_v1 = vsel %vm950_vm5, %v949_v0, %v945_v63 }
 0x4f5   : > { %1254 = vmatmul.msk.f32.vlgmr.msra.gmra.mxu0 %vm545_vm0, %v951_v1 }
 0x572   : > { %v981_v3 = vpop.f32.mrf.mxu0 }
 0x573   : > { %v984_v4 = vadd.f32 %v981_v3, %v952_v2 }
 0x575   : > { %985 = vst.msk [vmem:[#allocation2] sm:$0xff] %vm545_vm0, %v984_v4 }
 0x57c   : > { %v991_v54 = vld [vmem:[#allocation2] sm:$0xff] }
 0x57d   : > { %v992_v10 = vadd.f32 %v991_v54, %v990_v8 }
 0x57f   : > { %v996_v11 = vadd.f32 %v995_v9, %v992_v10 }
 0x581   : > { %v999_v12 = vsel %vm545_vm0, %v996_v11, 0.0 }
 0x582   : > { %1000 = vadd.xlane.f32.xlu0 %v999_v12 }
 0x5f5   : > { %v1001_v20 = vpop.xlane.xlu0 %1000 }
 0x5f6   : > { %v1009_v21 = vmul.f32 %v1008_v19, %v1001_v20 }
 0x5f8   : > { %v1010_v22 = vsub.f32 %v996_v11, %v1009_v21 }
 0x5fa   : > { %v1011_v23 = vmul.f32 %v1010_v22, %v1010_v22 }
 0x5fc   : > { %v1012_v24 = vsel %vm545_vm0, %v1011_v23, 0.0 }
 0x5fd   : > { %1013 = vadd.xlane.f32.xlu1 %v1012_v24 }
 0x670   : > { %v1014_v25 = vpop.xlane.xlu1 %1013 }
 0x671   : > { %v1015_v26 = vmul.f32 %v1014_v25, %v1008_v19 }
 0x673   : > { %v1016_v27 = vadd.f32 1e-05, %v1015_v26 }
 0x675   : > { %1418 = vrsqrt.f32 %v1016_v27  ;;  %vm1023_vm7 = vweird.f32 %v1016_v27 }
 0x67b   : > { %v1419_v28 = vpop.eup %1418 }
 0x67c   : > { %v1018_v29 = vmul.f32 %v1419_v28, %v1016_v27  ;;  %vm1024_vm6 = vweird.f32 %v1419_v28 }
 0x67d   : > { %vm1025_vm0 = vmor %vm1023_vm7, %vm1024_vm6 }
 0x67e   : > { %v1019_v30 = vmul.f32 %v1419_v28, %v1018_v29 }
 0x680   : > { %v1020_v31 = vmul.f32 0.5, %v1019_v30 }
 0x682   : > { %v1021_v32 = vsub.f32 1.5, %v1020_v31 }
 0x684   : > { %v1022_v33 = vmul.f32 %v1419_v28, %v1021_v32 }
 0x686   : > { %v1026_v35 = vsel %vm1025_vm0, %v1419_v28, %v1022_v33 }
 0x687   : > { %v1027_v37 = vmul.f32 %v1026_v35, %v1010_v22 }
 0x689   : > { %v1031_v38 = vmul.f32 %v1398_v34, %v1027_v37 }
 0x68b   : > { %v1035_v39 = vadd.f32 %v1399_v36, %v1031_v38 }
 0x68d   : > { %v1036_v40 = vpack.c.bf16 %v1035_v39, %v1035_v39 }
 0x68f   : > { %1038 = vst.msk [vmem:[%s534_s24] sm:$0xf] %vm1037_vm8, %v1036_v40 }
 0x690   : > { %1597 = shalt.err (!%p1594_p13)
}
 0x691   : > { %1302 = dma.vmem_to_hbm [thread:$0]  (%p1825_p4), %s1054_s16, 64, %s1056_s27, %s1040_s28  }
 0x692 PF: > { %s2020_s29 = sld [smem:[#allocation18_spill]]  ;;  %p1322_p0 = pnand %p1228_p6, %p1833_p7 }
 0x694   : > { %p1323_p2 = pneg %p1322_p0 }
 0x698   : > { %s1067_s15 = sand.u32 1, %s2020_s29  }
 0x699   : > { %s1068_s17 = scalar_lea.sflag [#allocation5], %s1067_s15 }
 0x69a   : > { %1639 = dma.done.wait (%p1323_p2), %s1068_s17, 64  }
 0x69b   : > { %1641 = vsyncadd (%p1323_p2), %s1068_s17, 4294967232  ;;  %s30_s18 = sadd.s32 1, %s1664_s18   ;;  %s2022_s19 = sld [smem:[#allocation19_spill]] }
 0x69c   : > { %p27_p5 = scmp.ge.s32.totalorder %s30_s18, 4   ;;  %s2023_s15 = sld [smem:[#allocation23_spill]] }
 0x69d   : > { %s2024_s16 = sld [smem:[#allocation20_spill]]  ;;  %s2026_s13 = smov %s1648_s14 }
 0x69e   : > { %s2025_s17 = sld [smem:[#allocation21_spill]]  ;;  %29 = sbr.rel (!%p27_p5) target bundleno = 14 (0xe), region = 147 }
 0x6a1   : > { %s2027_s14 = smov %s2022_s19 }
 0x6a3   :  { %1074 = vsyncpa [#allocation4], 1 }
 0x6a4   :  { %1076 = vsyncpa [#allocation4 + $0x1], 1 }
 0x6a5   :  { %1077 = vsyncpa [#allocation7], 1 }
 0x6a6   :  { %1079 = vsyncpa [#allocation7 + $0x1], 1 }
 0x6a7   :  { %1080 = vsyncpa [#allocation10], 1 }
 0x6a8   :  { %1081 = vsyncpa [#allocation5], 1 }
 0x6a9   :  { %1083 = vsyncpa [#allocation5 + $0x1], 1 }

</bundles_post_ra>
